<compile_context>
chip_gen: v7x
topology: tpu7x:2x2x1
jax: 0.10.0
libtpu: 0.0.40
codegen_flags: <defaults>
</compile_context>

<pallas_src>
import jax
import jax.numpy as jnp
from jax.experimental import pallas as pl
from jax.experimental.pallas import tpu as pltpu


def _relu_maxout_kernel(x_ref, o_ref):
    # x_ref: (1, 2, TS, L) block; o_ref: (1, TS, L) block.
    a = x_ref[0, 0, :, :]            # first channel-half tile  (TS, L)
    b = x_ref[0, 1, :, :]            # second channel-half tile (TS, L)
    # max(relu(a), relu(b)) == relu(max(a, b))
    o_ref[0, :, :] = jnp.maximum(jnp.maximum(a, b), jnp.zeros((), a.dtype))


def relu_maxout(x, *, max_rows_per_block=2048):
    """x: (N, C, H, W) NCHW, C even. Returns (N, C//2, H, W)."""
    N, C, H, W = x.shape
    assert C % 2 == 0, "channel dim must be even for maxout split"
    Ch = C // 2
    F = Ch * H * W                     # flat size of one channel half

    if F % 128 == 0:
        # Lane-dense view of the flat per-half stream: (S, 128).
        L = 128
        S = F // L
    else:
        # TODO(synk): F not a multiple of 128 (e.g. 7x7 spatial): fall back to
        # full-extent (Ch, H*W) blocks — correct, but lane-masked.
        L = H * W
        S = Ch

    # Tile the row axis: TS is either the full extent or a multiple of 8.
    TS = S if S <= max_rows_per_block else max_rows_per_block
    grid = (N, pl.cdiv(S, TS))

    xr = x.reshape(N, 2, S, L)         # zero-copy view for contiguous NCHW

    out = pl.pallas_call(
        _relu_maxout_kernel,
        out_shape=jax.ShapeDtypeStruct((N, S, L), x.dtype),
        grid=grid,
        in_specs=[pl.BlockSpec((1, 2, TS, L), lambda n, s: (n, 0, s, 0))],
        out_specs=pl.BlockSpec((1, TS, L), lambda n, s: (n, s, 0)),
        compiler_params=pltpu.CompilerParams(
            dimension_semantics=("parallel", "parallel"),
            vmem_limit_bytes=32 * 1024 * 1024,
        ),
    )(xr)
    return out.reshape(N, Ch, H, W)


def _reference(x):
    a, b = jnp.split(x, 2, axis=1)
    return jnp.maximum(jax.nn.relu(a), jax.nn.relu(b))


if __name__ == "__main__":
    key = jax.random.PRNGKey(0)

    # Primary test: batch=2, channels=4, spatial=16x16 (module semantics).
    x = jax.random.normal(key, (2, 4, 16, 16), dtype=jnp.float32)
    y = jax.block_until_ready(relu_maxout(x))
    ref = _reference(x)
    assert y.shape == (2, 2, 16, 16)
    assert jnp.allclose(y, ref, atol=1e-6, rtol=1e-6)

    # Extra check: odd spatial size exercises the non-128-multiple fallback.
    k1, k2 = jax.random.split(key)
    x2 = jax.random.normal(k1, (2, 6, 5, 5), dtype=jnp.float32)
    y2 = jax.block_until_ready(relu_maxout(x2))
    assert jnp.allclose(y2, _reference(x2), atol=1e-6, rtol=1e-6)

    # Extra check: large enough to exercise multi-step row tiling (grid=(2,2)).
    x3 = jax.random.normal(k2, (2, 4, 512, 512), dtype=jnp.float32)
    y3 = jax.block_until_ready(relu_maxout(x3))
    assert jnp.allclose(y3, _reference(x3), atol=1e-6, rtol=1e-6)

    print("KERNEL_OK")
</pallas_src>

<mosaic_0001>
module attributes {stable_mosaic.version = 11 : i64} {
  func.func @_relu_maxout_kernel(%arg0: i32, %arg1: i32, %arg2: memref<1x2x4x128xf32, #tpu.memory_space<vmem>>, %arg3: memref<1x4x128xf32, #tpu.memory_space<vmem>>) attributes {dimension_semantics = [#tpu.dimension_semantics<parallel>, #tpu.dimension_semantics<parallel>], iteration_bounds = array<i64: 2, 1>, scalar_prefetch = 0 : i64, scratch_operands = 0 : i64, tpu.core_type = #tpu.core_type<tc>, window_params = [{transform_indices = @transform_0, window_bounds = array<i64: 1, 2, 4, 128>}, {transform_indices = @transform_1, window_bounds = array<i64: 1, 4, 128>}]} {
    %c0 = arith.constant 0 : index
    %c0_0 = arith.constant 0 : index
    %c0_1 = arith.constant 0 : index
    %c0_2 = arith.constant 0 : index
    %0 = vector.load %arg2[%c0, %c0_0, %c0_1, %c0_2] : memref<1x2x4x128xf32, #tpu.memory_space<vmem>>, vector<1x1x4x128xf32>
    %1 = vector.shape_cast %0 : vector<1x1x4x128xf32> to vector<4x128xf32>
    %c0_3 = arith.constant 0 : index
    %c1 = arith.constant 1 : index
    %c0_4 = arith.constant 0 : index
    %c0_5 = arith.constant 0 : index
    %2 = vector.load %arg2[%c0_3, %c1, %c0_4, %c0_5] : memref<1x2x4x128xf32, #tpu.memory_space<vmem>>, vector<1x1x4x128xf32>
    %3 = vector.shape_cast %2 : vector<1x1x4x128xf32> to vector<4x128xf32>
    %4 = arith.maximumf %1, %3 : vector<4x128xf32>
    %cst = arith.constant 0.000000e+00 : f32
    %5 = vector.broadcast %cst : f32 to vector<4x128xf32>
    %6 = arith.maximumf %4, %5 : vector<4x128xf32>
    %c0_6 = arith.constant 0 : index
    %c0_7 = arith.constant 0 : index
    %c0_8 = arith.constant 0 : index
    %7 = vector.load %arg3[%c0_6, %c0_7, %c0_8] : memref<1x4x128xf32, #tpu.memory_space<vmem>>, vector<1x4x128xf32>
    %8 = vector.shape_cast %7 : vector<1x4x128xf32> to vector<4x128xf32>
    %9 = vector.shape_cast %6 : vector<4x128xf32> to vector<1x4x128xf32>
    tpu.vector_store %arg3[%c0_6, %c0_7, %c0_8], %9 {strides = array<i32>} : memref<1x4x128xf32, #tpu.memory_space<vmem>>, vector<1x4x128xf32>,
    return
  }
  func.func @transform_0(%arg0: i32, %arg1: i32) -> (i32, i32, i32, i32) {
    %c0_i32 = arith.constant 0 : i32
    %c0_i32_0 = arith.constant 0 : i32
    %c0_i32_1 = arith.constant 0 : i32
    return %arg0, %c0_i32, %arg1, %c0_i32_0 : i32, i32, i32, i32
  }
  func.func @transform_1(%arg0: i32, %arg1: i32) -> (i32, i32, i32) {
    %c0_i32 = arith.constant 0 : i32
    %c0_i32_0 = arith.constant 0 : i32
    return %arg0, %arg1, %c0_i32 : i32, i32, i32
  }
}

</mosaic_0001>

<bundles_post_ra>
// kernel: tpu_custom_call.1
= control target key start
LH: loop header
LB: loop body
LE: loop exit
PB: predicated region body
PF: predicated region fallthrough
CT: control target
= control target key end

     0   :  { %6 = vsyncpa [#allocation3], 0  ;;  %s636_s0 = inlined_call_operand.hbm [shape: f32[2,2,4,128], index: 0, kind: input, shape index: {}]   ;;  %s637_s1 = inlined_call_operand.hbm [shape: f32[2,4,128], index: 1, kind: output, shape index: {}]  }
   0x1   :  { %8 = vsyncpa [#allocation3 + $0x1], 0 }
   0x2   :  { %9 = vsyncpa [#allocation4], 0 }
   0x3   :  { %11 = vsyncpa [#allocation4 + $0x1], 0  ;;  %s462_s6 = smov 0   ;;  %s464_s7 = smov 0  }
   0x4   :  { %s466_s8 = smov 0   ;;  %s468_s9 = smov 0  }
   0x5   :  { %s470_s10 = smov 0   ;;  %s472_s11 = smov 0  }
   0x6 LB: > { %s254_s12 = sadd.s32 4294967295, %s446_s11   ;;  %s255_s13 = sadd.s32 4294967294, %s446_s11   ;;  %s446_s11 = sphi %s472_s11, %s17_s11   ;;  %s442_s10 = sphi %s470_s10, %s652_s10   ;;  %s438_s9 = sphi %s468_s9, %s651_s9   ;;  %s434_s8 = sphi %s466_s8, %s650_s8   ;;  %s430_s7 = sphi %s464_s7, %s649_s7   ;;  %s426_s6 = sphi %s462_s6, %s648_s6  }
   0x7   : > { %s29_s14 = sadd.s32 1, %s442_s10  ;;  %s38_s15 = sadd.s32 1, %s434_s8 }
   0x8   : > { %p31_p0 = scmp.ge.s32.totalorder %s29_s14, 2  ;;  %p45_p1 = scmp.ne.s32.totalorder %s434_s8, %s430_s7 }
   0x9   : > { %p46_p2 = scmp.eq.s32.totalorder %s446_s11, 0  ;;  %p51_p3 = scmp.ne.s32.totalorder %s430_s7, %s426_s6 }
   0xa   : > { %s654_s14 = smov (%p31_p0, %s29_s14), 0  ;;  %p52_p5 = scmp.eq.s32.totalorder %s254_s12, 0 }
   0xb   : > { %p503_p4 = por %p46_p2, %p45_p1  ;;  %s33_s17 = ssub.s32 %s442_s10, %s654_s14 }
   0xc   : > { %p77_p6 = scmp.eq.s32.totalorder %s254_s12, 1  ;;  %p36_p7 = scmp.eq.s32.totalorder %s33_s17, 0 }
   0xd   : > { %p509_p8 = por %p52_p5, %p51_p3  ;;  %p83_p10 = scmp.eq.s32.totalorder %s255_s13, 1 }
   0xe   : > { %p513_p9 = por %p77_p6, %p45_p1  ;;  %p282_p13 = scmp.lt.s32.totalorder %s446_s11, 2 }
   0xf   : > { %s518_s20 = scalar_select %p36_p7, %s434_s8, %s38_s15  }
  0x10   : > { %s641_s19 = scalar_select %p513_p9, 1, 0 }
  0x11   : > { %p520_p11 = por %p83_p10, %p51_p3  ;;  %s103_s22 = sand.u32 1, %s434_s8  }
  0x12   : > { %s258_s23 = sshll.u32 %s103_s22, 3  ;;  %s269_s24 = sshll.u32 %s442_s10, 7 }
  0x13   : > { %s642_s21 = scalar_select %p520_p11, 1, 0 }
  0x14   : > { %s531_s27 = scalar_lea.hbm %s636_s0, %s269_s24  ;;  %s107_s28 = scalar_lea.vmem [#allocation2], %s258_s23 }
  0x15   : > { %s115_s29 = sshll.u32 %s107_s28, 4  ;;  %p537_p0 = pnand %p282_p13, %p503_p4  ;;  %s533_s29 = int_to_ptr.vmem [resolvable:$true] %s115_s29 }
  0x16   : > { %s542_s2 = scalar_lea.sflag [#allocation3], %s103_s22  ;;  %s334_s3 = scalar_lea.hbm %s531_s27, 128 }
  0x17   : > { %p335_p2 = scmp.ne.s32.totalorder %s531_s27, %s334_s3  ;;  %p336_p3 = pneg %p537_p0 }
  0x18   : > { %s339_s12 = scalar_lea.hbm %s636_s0, 256  ;;  %p340_p4 = scmp.lt.u32.totalorder %s531_s27, %s636_s0 }
  0x19   : > { %p337_p5 = pnand %p336_p3, %p335_p2  ;;  %p341_p7 = scmp.lt.u32.totalorder %s339_s12, %s334_s3 }
  0x1a   : > { %p343_p13 = scmp.lt.u32.totalorder %s334_s3, %s531_s27 }
  0x1b   : > { %p338_p6 = pneg %p337_p5  ;;  %p342_p10 = por %p341_p7, %p340_p4 }
  0x1d   : > { %p344_p12 = por %p343_p13, %p342_p10 }
  0x1f   : > { %p345_p1 = pnand %p344_p12, %p338_p6 }
  0x21   : > { %348 = shalt.err (!%p345_p1)
}
  0x22   : > { %s349_s16 = scalar_lea.vmem %s533_s29, 128  ;;  %s448_s17 = smov [#allocation2]  }
  0x23   : > { %p350_p2 = scmp.ne.s32.totalorder %s533_s29, %s349_s16  ;;  %s354_s22 = sshll.u32 %s448_s17, 4  ;;  %s355_s22 = int_to_ptr.vmem [resolvable:$false] %s354_s22 }
  0x24   : > { %s356_s23 = scalar_lea.vmem %s355_s22, 256  ;;  %p357_p9 = scmp.lt.s32.totalorder %s533_s29, %s355_s22 }
  0x25   : > { %p352_p5 = pnand %p350_p2, %p336_p3  ;;  %p358_p4 = scmp.lt.s32.totalorder %s356_s23, %s349_s16 }
  0x27   : > { %p353_p11 = pneg %p352_p5  ;;  %p359_p7 = por %p358_p4, %p357_p9 }
  0x29   : > { %p360_p10 = pnand %p359_p7, %p353_p11 }
  0x2b   : > { %363 = shalt.err (!%p360_p10)
}
  0x2c   : > { %s449_s24 = smov 64   ;;  %s450_s25 = smov 4  }
  0x2d   : > { %277 = dma.hbm_to_vmem [thread:$0]  (!%p537_p0), %s531_s27, 128, %s533_s29, %s542_s2, %s449_s24, %s449_s24, %s450_s25  }
  0x2e   : > { %p123_p12 = scmp.lt.s32.totalorder %s446_s11, 3  ;;  %p644_p1 = scmp.ge.s32.totalorder %s446_s11, 1 }
  0x30   : > { %p124_p3 = pnand %p644_p1, %p123_p12 }
  0x31   : > { %s574_s26 = sand.u32 (!%p124_p3), 1, %s430_s7  }
  0x32   : > { %127 = sbr.rel (%p124_p3) target bundleno = 85 (0x55), region = 24  ;;  %s262_s28 = sshll.u32 (!%p124_p3), %s574_s26, 3 }
  0x33   : > { %s130_s3 = scalar_lea.sflag (!%p124_p3), [#allocation3], %s574_s26  ;;  %s133_s4 = scalar_lea.vmem (!%p124_p3), [#allocation2], %s262_s28 }
  0x39   : > { %417 = dma.done.wait (%p509_p8), %s130_s3, 128  }
  0x3a   : > { %419 = vsyncadd (%p509_p8), %s130_s3, 4294967168  ;;  %s263_s27 = sshll.u32 %s574_s26, 2  ;;  %v152_v0 = vld [vmem:[%s133_s4] sm:$0xf]  ;;  %v264_v1 = vld [vmem:[%s133_s4 + $0x4] sm:$0xf] }
  0x3b   : > { %s151_s29 = scalar_lea.vmem [#allocation5], %s263_s27  ;;  %s266_s2 = sshll.u32 %s438_s9, 6  ;;  %v155_v2 = vmax.f32 %v152_v0, %v264_v1 }
  0x3c   : > { %s173_s30 = sshll.u32 %s151_s29, 4  ;;  %s589_s18 = scalar_lea.hbm %s637_s1, %s266_s2  ;;  %s584_s30 = int_to_ptr.vmem [resolvable:$true] %s173_s30 }
  0x3d   : > { %v156_v3 = vmax.f32 %v155_v2, 0.0  ;;  %s159_s13 = scalar_lea.sflag [#allocation4], %s574_s26  ;;  %s364_s15 = scalar_lea.vmem %s584_s30, 64 }
  0x3e   : > { %p365_p8 = scmp.ne.s32.totalorder %s584_s30, %s364_s15  ;;  %p645_p9 = scmp.ne.s32.totalorder %s641_s19, 0 }
  0x3f   : > { %157 = vst [vmem:[%s151_s29] sm:$0xf] %v156_v3  ;;  %s451_s9 = smov [#allocation5]  }
  0x40   : > { %p366_p11 = pnand %p365_p8, %p645_p9  ;;  %s368_s16 = sshll.u32 %s451_s9, 4  ;;  %s369_s16 = int_to_ptr.vmem [resolvable:$false] %s368_s16 }
  0x41   : > { %s370_s17 = scalar_lea.vmem %s369_s16, 128  ;;  %p371_p6 = scmp.lt.s32.totalorder %s584_s30, %s369_s16 }
  0x42   : > { %p367_p0 = pneg %p366_p11  ;;  %p372_p13 = scmp.lt.s32.totalorder %s370_s17, %s364_s15 }
  0x44   : > { %p373_p2 = por %p372_p13, %p371_p6 }
  0x46   : > { %p374_p5 = pnand %p373_p2, %p367_p0 }
  0x48   : > { %377 = shalt.err (!%p374_p5)
}
  0x49   : > { %s378_s22 = scalar_lea.hbm %s589_s18, 64  ;;  %s382_s25 = scalar_lea.hbm %s637_s1, 128 }
  0x4a   : > { %p379_p4 = scmp.ne.s32.totalorder %s589_s18, %s378_s22  ;;  %p383_p12 = scmp.lt.u32.totalorder %s589_s18, %s637_s1 }
  0x4b   : > { %p384_p1 = scmp.lt.u32.totalorder %s382_s25, %s378_s22  ;;  %p386_p8 = scmp.lt.u32.totalorder %s378_s22, %s589_s18 }
  0x4c   : > { %p380_p7 = pnand %p379_p4, %p645_p9 }
  0x4d   : > { %p385_p3 = por %p384_p1, %p383_p12 }
  0x4e   : > { %p381_p10 = pneg %p380_p7 }
  0x4f   : > { %p387_p11 = por %p386_p8, %p385_p3 }
  0x51   : > { %p388_p0 = pnand %p387_p11, %p381_p10 }
  0x53   : > { %391 = shalt.err (!%p388_p0)
}
  0x54   : > { %272 = dma.vmem_to_hbm [thread:$0]  (%p645_p9), %s584_s30, 64, %s589_s18, %s159_s13  }
  0x55 PF: > { %s185_s3 = sand.u32 1, %s426_s6   ;;  %p646_p6 = scmp.ne.s32.totalorder %s642_s21, 0 }
  0x56   : > { %p647_p13 = scmp.ge.s32.totalorder %s446_s11, 2  ;;  %s186_s4 = scalar_lea.sflag [#allocation4], %s185_s3 }
  0x58   : > { %p279_p2 = pnand %p647_p13, %p646_p6 }
  0x5a   : > { %421 = dma.done.wait (!%p279_p2), %s186_s4, 64  }
  0x5b   : > { %423 = vsyncadd (!%p279_p2), %s186_s4, 4294967232  ;;  %s17_s11 = sadd.s32 1, %s446_s11   ;;  %s648_s6 = smov %s430_s7 }
  0x5c   : > { %p14_p5 = scmp.ge.s32.totalorder %s17_s11, 4   ;;  %s649_s7 = smov %s434_s8 }
  0x5d   : > { %s650_s8 = smov %s518_s20  ;;  %s651_s9 = smov %s442_s10 }
  0x5e   : > { %s652_s10 = smov %s654_s14  ;;  %16 = sbr.rel (!%p14_p5) target bundleno = 6 (0x6), region = 70 }
  0x65   :  { %191 = vsyncpa [#allocation3], 1 }
  0x66   :  { %193 = vsyncpa [#allocation3 + $0x1], 1 }
  0x67   :  { %194 = vsyncpa [#allocation4], 1 }
  0x68   :  { %196 = vsyncpa [#allocation4 + $0x1], 1 }

</bundles_post_ra>
